<compile_context>
chip_gen: v5e
topology: v5e:2x2
jax: 0.10.0
libtpu: 0.0.40
codegen_flags: <defaults>
</compile_context>

<pallas_src>
import functools

import jax
import jax.numpy as jnp
from jax.experimental import pallas as pl
from jax.experimental.pallas import tpu as pltpu


def two_tower_kernel(hidden_dim,
                     x_ref,
                     w1_ref, b1_ref,          # fused layer-1: [D, 2H], [1, 2H]
                     wu2_ref, bu2_ref,        # user layer-2:  [H, E], [1, E]
                     wi2_ref, bi2_ref,        # item layer-2:  [H, E], [1, E]
                     sim_ref):
    x = x_ref[...]

    # ---- fused layer 1 (both towers in one MXU matmul) + ReLU ----
    h = jnp.dot(x, w1_ref[...], preferred_element_type=jnp.float32) + b1_ref[...]
    h = jnp.maximum(h, 0.0)
    # cast back to the weight dtype so a bf16 configuration keeps layer 2 on the
    # fast MXU path (no-op for the default f32 configuration)
    h = h.astype(wu2_ref.dtype)
    hu = h[:, :hidden_dim]   # user hidden  (slice on a 128-aligned boundary)
    hi = h[:, hidden_dim:]   # item hidden

    # ---- layer 2 per tower ----
    user_emb = jnp.dot(hu, wu2_ref[...], preferred_element_type=jnp.float32) + bu2_ref[...]
    item_emb = jnp.dot(hi, wi2_ref[...], preferred_element_type=jnp.float32) + bi2_ref[...]

    # ---- similarity: batched dot product over embedding dim (XLU reduce) ----
    sim_ref[...] = jnp.sum(user_emb * item_emb, axis=-1, keepdims=True)


def two_tower_retrieval(x, params, *, block_b=256, compute_dtype=None):
    """x: [B, D] float32; params: 8 arrays (see make_params). Returns sim [B, 1]."""
    wu1, bu1, wu2, bu2, wi1, bi1, wi2, bi2 = params
    B, D = x.shape
    H = wu1.shape[1]
    E = wu2.shape[1]

    # Fuse the two first-layer weights along the output axis: [D, 2H], [1, 2H].
    w1 = jnp.concatenate([wu1, wi1], axis=1)
    b1 = jnp.concatenate([bu1, bi1], axis=1)

    # Optional bf16 weights/activations (keep f32 accumulation + f32 biases).
    if compute_dtype is not None:
        x = x.astype(compute_dtype)
        w1 = w1.astype(compute_dtype)
        wu2 = wu2.astype(compute_dtype)
        wi2 = wi2.astype(compute_dtype)

    # Batch tile: multiple of 8 sublanes; pad B so the grid divides evenly.
    tb = min(block_b, B)
    tb = ((tb + 7) // 8) * 8
    num_tiles = pl.cdiv(B, tb)
    b_pad = num_tiles * tb
    if b_pad != B:
        x = jnp.pad(x, ((0, b_pad - B), (0, 0)))

    itemsize = jnp.dtype(x.dtype).itemsize
    flops = (2 * b_pad * D * (2 * H)       # fused layer-1 matmul
             + 2 * 2 * b_pad * H * E       # two layer-2 matmuls
             + 2 * b_pad * E)              # similarity mul + reduce
    bytes_accessed = (int(x.size) * itemsize
                      + sum(int(p.size) * jnp.dtype(p.dtype).itemsize
                            for p in (w1, b1, wu2, bu2, wi2, bi2))
                      + b_pad * 4)

    kernel = functools.partial(two_tower_kernel, H)
    # NOTE: weight/bias blocks use constant index_maps -> fetched once and kept
    # resident across grid steps; x / out tiles are auto double-buffered.
    # For very large D/H/E raise vmem_limit_bytes in CompilerParams (and/or
    # shrink tb); the example footprint is well under the default scoped VMEM.
    sim = pl.pallas_call(
        kernel,
        out_shape=jax.ShapeDtypeStruct((b_pad, 1), jnp.float32),
        grid=(num_tiles,),
        in_specs=[
            pl.BlockSpec((tb, D), lambda i: (i, 0)),        # x tile (pipelined)
            pl.BlockSpec((D, 2 * H), lambda i: (0, 0)),     # fused W1 (resident)
            pl.BlockSpec((1, 2 * H), lambda i: (0, 0)),     # fused b1
            pl.BlockSpec((H, E), lambda i: (0, 0)),         # Wu2
            pl.BlockSpec((1, E), lambda i: (0, 0)),         # bu2
            pl.BlockSpec((H, E), lambda i: (0, 0)),         # Wi2
            pl.BlockSpec((1, E), lambda i: (0, 0)),         # bi2
        ],
        out_specs=pl.BlockSpec((tb, 1), lambda i: (i, 0)),
        compiler_params=pltpu.CompilerParams(
            dimension_semantics=("parallel",)),             # megacore on v7x
        cost_estimate=pl.CostEstimate(
            flops=flops, transcendentals=0, bytes_accessed=bytes_accessed),
    )(x, w1, b1, wu2, bu2, wi2, bi2)
    return sim[:B]


def make_params(key, feat_dim, hidden_dim, emb_dim):
    ks = jax.random.split(key, 8)
    scale = 0.1
    # user tower
    wu1 = scale * jax.random.normal(ks[0], (feat_dim, hidden_dim), jnp.float32)
    bu1 = scale * jax.random.normal(ks[1], (1, hidden_dim), jnp.float32)
    wu2 = scale * jax.random.normal(ks[2], (hidden_dim, emb_dim), jnp.float32)
    bu2 = scale * jax.random.normal(ks[3], (1, emb_dim), jnp.float32)
    # item tower
    wi1 = scale * jax.random.normal(ks[4], (feat_dim, hidden_dim), jnp.float32)
    bi1 = scale * jax.random.normal(ks[5], (1, hidden_dim), jnp.float32)
    wi2 = scale * jax.random.normal(ks[6], (hidden_dim, emb_dim), jnp.float32)
    bi2 = scale * jax.random.normal(ks[7], (1, emb_dim), jnp.float32)
    return (wu1, bu1, wu2, bu2, wi1, bi1, wi2, bi2)


def reference(x, params):
    wu1, bu1, wu2, bu2, wi1, bi1, wi2, bi2 = params
    u = jnp.maximum(x @ wu1 + bu1, 0.0) @ wu2 + bu2
    i = jnp.maximum(x @ wi1 + bi1, 0.0) @ wi2 + bi2
    return jnp.sum(u * i, axis=-1, keepdims=True)


if __name__ == "__main__":
    key = jax.random.PRNGKey(0)
    kx, kp = jax.random.split(key)

    # 128-aligned dims so MXU tiles are full; B=512 with TB=256 -> 2 grid steps.
    B, D, H, E = 512, 128, 128, 128
    x = jax.random.normal(kx, (B, D), jnp.float32)
    params = make_params(kp, D, H, E)

    fn = jax.jit(two_tower_retrieval, static_argnames=("block_b", "compute_dtype"))
    sim = jax.block_until_ready(fn(x, params))

    ref = reference(x, params)
    assert sim.shape == (B, 1)
    assert jnp.allclose(sim, ref, atol=1e-2, rtol=1e-2), (
        float(jnp.max(jnp.abs(sim - ref))))

    print("KERNEL_OK")
</pallas_src>

<mosaic_0001>
module attributes {stable_mosaic.version = 11 : i64} {
  func.func @two_tower_kernel(%arg0: i32, %arg1: memref<256x128xf32, #tpu.memory_space<vmem>>, %arg2: memref<128x256xf32, #tpu.memory_space<vmem>>, %arg3: memref<1x256xf32, #tpu.memory_space<vmem>>, %arg4: memref<128x128xf32, #tpu.memory_space<vmem>>, %arg5: memref<1x128xf32, #tpu.memory_space<vmem>>, %arg6: memref<128x128xf32, #tpu.memory_space<vmem>>, %arg7: memref<1x128xf32, #tpu.memory_space<vmem>>, %arg8: memref<256x1xf32, #tpu.memory_space<vmem>>) attributes {dimension_semantics = [#tpu.dimension_semantics<parallel>], iteration_bounds = array<i64: 2>, scalar_prefetch = 0 : i64, scratch_operands = 0 : i64, tpu.core_type = #tpu.core_type<tc>, window_params = [{transform_indices = @transform_0, window_bounds = array<i64: 256, 128>}, {pipeline_mode = #tpu.pipeline_mode<synchronous>, transform_indices = @transform_1, window_bounds = array<i64: 128, 256>}, {pipeline_mode = #tpu.pipeline_mode<synchronous>, transform_indices = @transform_2, window_bounds = array<i64: 1, 256>}, {pipeline_mode = #tpu.pipeline_mode<synchronous>, transform_indices = @transform_3, window_bounds = array<i64: 128, 128>}, {pipeline_mode = #tpu.pipeline_mode<synchronous>, transform_indices = @transform_4, window_bounds = array<i64: 1, 128>}, {pipeline_mode = #tpu.pipeline_mode<synchronous>, transform_indices = @transform_5, window_bounds = array<i64: 128, 128>}, {pipeline_mode = #tpu.pipeline_mode<synchronous>, transform_indices = @transform_6, window_bounds = array<i64: 1, 128>}, {transform_indices = @transform_7, window_bounds = array<i64: 256, 1>}]} {
    %c0 = arith.constant 0 : index
    %c0_0 = arith.constant 0 : index
    %0 = vector.load %arg1[%c0, %c0_0] : memref<256x128xf32, #tpu.memory_space<vmem>>, vector<256x128xf32>
    %c0_1 = arith.constant 0 : index
    %c0_2 = arith.constant 0 : index
    %1 = vector.load %arg2[%c0_1, %c0_2] : memref<128x256xf32, #tpu.memory_space<vmem>>, vector<128x256xf32>
    %cst = arith.constant dense<0.000000e+00> : vector<256x256xf32>
    %2 = tpu.matmul %0, %1, %cst {dimension_numbers = #tpu.dot_dimension_numbers<[1], [0], [0], [1], [0, 0, 1, 1], [], []>} : vector<256x128xf32>, vector<128x256xf32>, vector<256x256xf32> -> vector<256x256xf32>
    %c0_3 = arith.constant 0 : index
    %c0_4 = arith.constant 0 : index
    %3 = vector.load %arg3[%c0_3, %c0_4] : memref<1x256xf32, #tpu.memory_space<vmem>>, vector<1x256xf32>
    %4 = vector.broadcast %3 : vector<1x256xf32> to vector<256x256xf32>
    %5 = arith.addf %2, %4 : vector<256x256xf32>
    %cst_5 = arith.constant 0.000000e+00 : f32
    %6 = vector.broadcast %cst_5 : f32 to vector<256x256xf32>
    %7 = arith.maximumf %5, %6 : vector<256x256xf32>
    %8 = vector.extract_strided_slice %7 {offsets = [0, 0], sizes = [256, 128], strides = [1, 1]} : vector<256x256xf32> to vector<256x128xf32>
    %9 = vector.extract_strided_slice %7 {offsets = [0, 128], sizes = [256, 128], strides = [1, 1]} : vector<256x256xf32> to vector<256x128xf32>
    %c0_6 = arith.constant 0 : index
    %c0_7 = arith.constant 0 : index
    %10 = vector.load %arg4[%c0_6, %c0_7] : memref<128x128xf32, #tpu.memory_space<vmem>>, vector<128x128xf32>
    %cst_8 = arith.constant dense<0.000000e+00> : vector<256x128xf32>
    %11 = tpu.matmul %8, %10, %cst_8 {dimension_numbers = #tpu.dot_dimension_numbers<[1], [0], [0], [1], [0, 0, 1, 1], [], []>} : vector<256x128xf32>, vector<128x128xf32>, vector<256x128xf32> -> vector<256x128xf32>
    %c0_9 = arith.constant 0 : index
    %c0_10 = arith.constant 0 : index
    %12 = vector.load %arg5[%c0_9, %c0_10] : memref<1x128xf32, #tpu.memory_space<vmem>>, vector<1x128xf32>
    %13 = vector.broadcast %12 : vector<1x128xf32> to vector<256x128xf32>
    %14 = arith.addf %11, %13 : vector<256x128xf32>
    %c0_11 = arith.constant 0 : index
    %c0_12 = arith.constant 0 : index
    %15 = vector.load %arg6[%c0_11, %c0_12] : memref<128x128xf32, #tpu.memory_space<vmem>>, vector<128x128xf32>
    %cst_13 = arith.constant dense<0.000000e+00> : vector<256x128xf32>
    %16 = tpu.matmul %9, %15, %cst_13 {dimension_numbers = #tpu.dot_dimension_numbers<[1], [0], [0], [1], [0, 0, 1, 1], [], []>} : vector<256x128xf32>, vector<128x128xf32>, vector<256x128xf32> -> vector<256x128xf32>
    %c0_14 = arith.constant 0 : index
    %c0_15 = arith.constant 0 : index
    %17 = vector.load %arg7[%c0_14, %c0_15] : memref<1x128xf32, #tpu.memory_space<vmem>>, vector<1x128xf32>
    %18 = vector.broadcast %17 : vector<1x128xf32> to vector<256x128xf32>
    %19 = arith.addf %16, %18 : vector<256x128xf32>
    %20 = arith.mulf %14, %19 : vector<256x128xf32>
    %cst_16 = arith.constant dense<0.000000e+00> : vector<256xf32>
    %21 = vector.multi_reduction <add>, %20, %cst_16 [1] : vector<256x128xf32> to vector<256xf32>
    %22 = vector.shape_cast %21 : vector<256xf32> to vector<256x1xf32>
    %c0_17 = arith.constant 0 : index
    %c0_18 = arith.constant 0 : index
    %23 = vector.load %arg8[%c0_17, %c0_18] : memref<256x1xf32, #tpu.memory_space<vmem>>, vector<256x1xf32>
    tpu.vector_store %arg8[%c0_17, %c0_18], %22 {strides = array<i32>} : memref<256x1xf32, #tpu.memory_space<vmem>>, vector<256x1xf32>,
    return
  }
  func.func @transform_0(%arg0: i32) -> (i32, i32) {
    %c0_i32 = arith.constant 0 : i32
    %c0_i32_0 = arith.constant 0 : i32
    return %arg0, %c0_i32 : i32, i32
  }
  func.func @transform_1(%arg0: i32) -> (i32, i32) {
    %c0_i32 = arith.constant 0 : i32
    %c0_i32_0 = arith.constant 0 : i32
    %c0_i32_1 = arith.constant 0 : i32
    return %c0_i32, %c0_i32_0 : i32, i32
  }
  func.func @transform_2(%arg0: i32) -> (i32, i32) {
    %c0_i32 = arith.constant 0 : i32
    %c0_i32_0 = arith.constant 0 : i32
    %c0_i32_1 = arith.constant 0 : i32
    return %c0_i32, %c0_i32_0 : i32, i32
  }
  func.func @transform_3(%arg0: i32) -> (i32, i32) {
    %c0_i32 = arith.constant 0 : i32
    %c0_i32_0 = arith.constant 0 : i32
    %c0_i32_1 = arith.constant 0 : i32
    return %c0_i32, %c0_i32_0 : i32, i32
  }
  func.func @transform_4(%arg0: i32) -> (i32, i32) {
    %c0_i32 = arith.constant 0 : i32
    %c0_i32_0 = arith.constant 0 : i32
    %c0_i32_1 = arith.constant 0 : i32
    return %c0_i32, %c0_i32_0 : i32, i32
  }
  func.func @transform_5(%arg0: i32) -> (i32, i32) {
    %c0_i32 = arith.constant 0 : i32
    %c0_i32_0 = arith.constant 0 : i32
    %c0_i32_1 = arith.constant 0 : i32
    return %c0_i32, %c0_i32_0 : i32, i32
  }
  func.func @transform_6(%arg0: i32) -> (i32, i32) {
    %c0_i32 = arith.constant 0 : i32
    %c0_i32_0 = arith.constant 0 : i32
    %c0_i32_1 = arith.constant 0 : i32
    return %c0_i32, %c0_i32_0 : i32, i32
  }
  func.func @transform_7(%arg0: i32) -> (i32, i32) {
    %c0_i32 = arith.constant 0 : i32
    %c0_i32_0 = arith.constant 0 : i32
    return %arg0, %c0_i32 : i32, i32
  }
}

</mosaic_0001>

<bundles_post_ra>
// kernel: two_tower_retrieval.1
= control target key start
LH: loop header
LB: loop body
LE: loop exit
PB: predicated region body
PF: predicated region fallthrough
CT: control target
= control target key end

     0   :  { %12 = vsyncpa [#allocation3], 0  ;;  %s1714_s0 = inlined_call_operand.vmem [shape: f32[512,128], index: 0, kind: input, shape index: {}]   ;;  %s1715_s1 = inlined_call_operand.vmem [shape: f32[128,256], index: 1, kind: input, shape index: {}]   ;;  %s1716_s2 = inlined_call_operand.vmem [shape: f32[1,256], index: 2, kind: input, shape index: {}]   ;;  %s1717_s3 = inlined_call_operand.hbm [shape: f32[128,128], index: 3, kind: input, shape index: {}]   ;;  %s1718_s4 = inlined_call_operand.vmem [shape: f32[1,128], index: 4, kind: input, shape index: {}]   ;;  %s1719_s5 = inlined_call_operand.hbm [shape: f32[128,128], index: 5, kind: input, shape index: {}]   ;;  %s1720_s6 = inlined_call_operand.vmem [shape: f32[1,128], index: 6, kind: input, shape index: {}]   ;;  %s1721_s7 = inlined_call_operand.vmem [shape: f32[512,1], index: 7, kind: output, shape index: {}]  }
   0x1   :  { %13 = vsyncpa [#allocation5], 0  ;;  %s1317_s24 = smov 0  }
   0x2 LB: > { %s219_s27 = sshll.u32 %s1717_s3, 4  ;;  %s1149_s28 = sadd.s32 4294967295, %s1271_s24   ;;  %s1271_s24 = sphi %s1317_s24, %s19_s24   ;;  %s220_s27 = int_to_ptr.hbm [resolvable:$true] %s219_s27 }
   0x3   : > { %p1151_p0 = scmp.ge.s32.totalorder %s1271_s24, 1  ;;  %p202_p1 = scmp.lt.s32.totalorder %s1271_s24, 3 }
   0x4   : > { %p1330_p2 = scmp.eq.s32.totalorder %s1149_s28, 0  ;;  %s1273_s8 = smov [#allocation2]  }
   0x5   : > { %p1334_p3 = pnand %p1151_p0, %p202_p1  ;;  %s221_s9 = sshll.u32 %s1273_s8, 4  ;;  %s222_s9 = int_to_ptr.vmem [resolvable:$true] %s221_s9 }
   0x6   : > { %s236_s12 = sshll.u32 %s1719_s5, 4  ;;  %s1274_s13 = smov [#allocation4]   ;;  %s237_s12 = int_to_ptr.hbm [resolvable:$true] %s236_s12 }
   0x7   : > { %p1172_p4 = pneg %p1334_p3  ;;  %s238_s14 = sshll.u32 %s1274_s13, 4  ;;  %s239_s14 = int_to_ptr.vmem [resolvable:$true] %s238_s14 }
   0x8   : > { %s1275_s15 = smov 128   ;;  %s1276_s16 = smov 8  }
   0x9   : > { %p1173_p5 = pnand %p1330_p2, %p1172_p4  ;;  %266 = sbr.rel (%p1334_p3) target bundleno = 681 (0x2a9), region = 48 }
   0xb   : > { %1175 = dma.hbm_to_vmem [thread:$0]  (!%p1173_p5), %s220_s27, 2048, %s222_s9, [#allocation3], %s1275_s15, %s1275_s15, %s1276_s16  }
   0xc   : > { %1178 = dma.hbm_to_vmem [thread:$0]  (!%p1173_p5), %s237_s12, 2048, %s239_s14, [#allocation5], %s1275_s15, %s1275_s15, %s1276_s16  }
   0xe   : > { %1262 = dma.done.wait (%p1330_p2), [#allocation3], 2048  }
   0xf   : > { %1264 = vsyncadd (%p1330_p2), [#allocation3], 4294965248 }
  0x10   : > { %1266 = dma.done.wait (%p1330_p2), [#allocation5], 2048  }
  0x11   : > { %1268 = vsyncadd (%p1330_p2), [#allocation5], 4294965248  ;;  %v378_v0 = vld [vmem:[%s1715_s1 + $0xf0] sm:$0xff]  ;;  %v379_v1 = vld [vmem:[%s1715_s1 + $0xf8] sm:$0xff]  ;;  %s1158_s30 = sshll.u32 %s1149_s28, 5  ;;  %vm1038_vm0 = vcmask 7168  }
  0x12   : > { %v376_v2 = vld [vmem:[%s1715_s1 + $0xe0] sm:$0xff]  ;;  %386 = vmatpush.msra.mxu0 %v378_v0  ;;  %499 = vmatpush.msra.mxu1 %v379_v1  ;;  %v377_v3 = vld [vmem:[%s1715_s1 + $0xe8] sm:$0xff]  ;;  %v374_v4 = vld [vmem:[%s1715_s1 + $0xd0] sm:$0xff]  ;;  %p305_p6 = scmp.lt.s32.totalorder %s1158_s30, 63 }
  0x13   : > { %v375_v5 = vld [vmem:[%s1715_s1 + $0xd8] sm:$0xff]  ;;  %v372_v6 = vld [vmem:[%s1715_s1 + $0xc0] sm:$0xff]  ;;  %v373_v7 = vld [vmem:[%s1715_s1 + $0xc8] sm:$0xff] }
  0x14   : > { %387 = vmatpush.msra.mxu0 %v376_v2  ;;  %500 = vmatpush.msra.mxu1 %v377_v3  ;;  %v370_v8 = vld [vmem:[%s1715_s1 + $0xb0] sm:$0xff]  ;;  %v371_v9 = vld [vmem:[%s1715_s1 + $0xb8] sm:$0xff]  ;;  %v368_v10 = vld [vmem:[%s1715_s1 + $0xa0] sm:$0xff]  ;;  %s1725_s30 = smov (!%p305_p6, %s1158_s30), 63 }
  0x15   : > { %v369_v11 = vld [vmem:[%s1715_s1 + $0xa8] sm:$0xff]  ;;  %v366_v12 = vld [vmem:[%s1715_s1 + $0x90] sm:$0xff]  ;;  %v367_v13 = vld [vmem:[%s1715_s1 + $0x98] sm:$0xff]  ;;  %s1159_s29 = sshll.u32 %s1725_s30, 3 }
  0x16   : > { %388 = vmatpush.msra.mxu0 %v374_v4  ;;  %501 = vmatpush.msra.mxu1 %v375_v5  ;;  %v364_v14 = vld [vmem:[%s1715_s1 + $0x80] sm:$0xff]  ;;  %v365_v15 = vld [vmem:[%s1715_s1 + $0x88] sm:$0xff]  ;;  %v362_v16 = vld [vmem:[%s1715_s1 + $0x70] sm:$0xff]  ;;  %s1455_s17 = scalar_lea.vmem %s1714_s0, %s1159_s29  ;;  %s1611_s11 = scalar_lea.vmem %s1721_s7, %s1159_s29 }
  0x17   : > { %v363_v17 = vld [vmem:[%s1715_s1 + $0x78] sm:$0xff]  ;;  %v360_v18 = vld [vmem:[%s1715_s1 + $0x60] sm:$0xff]  ;;  %v361_v19 = vld [vmem:[%s1715_s1 + $0x68] sm:$0xff] }
  0x18   : > { %389 = vmatpush.msra.mxu0 %v372_v6  ;;  %502 = vmatpush.msra.mxu1 %v373_v7  ;;  %v358_v20 = vld [vmem:[%s1715_s1 + $0x50] sm:$0xff]  ;;  %v359_v21 = vld [vmem:[%s1715_s1 + $0x58] sm:$0xff]  ;;  %v356_v22 = vld [vmem:[%s1715_s1 + $0x40] sm:$0xff] }
  0x19   : > { %v357_v23 = vld [vmem:[%s1715_s1 + $0x48] sm:$0xff]  ;;  %v354_v24 = vld [vmem:[%s1715_s1 + $0x30] sm:$0xff]  ;;  %v355_v25 = vld [vmem:[%s1715_s1 + $0x38] sm:$0xff] }
  0x1a   : > { %390 = vmatpush.msra.mxu0 %v370_v8  ;;  %503 = vmatpush.msra.mxu1 %v371_v9  ;;  %v352_v26 = vld [vmem:[%s1715_s1 + $0x20] sm:$0xff]  ;;  %v353_v27 = vld [vmem:[%s1715_s1 + $0x28] sm:$0xff]  ;;  %v350_v28 = vld [vmem:[%s1715_s1 + $0x10] sm:$0xff] }
  0x1b   : > { %v351_v29 = vld [vmem:[%s1715_s1 + $0x18] sm:$0xff]  ;;  %v348_v30 = vld [vmem:[%s1715_s1] sm:$0xff]  ;;  %v349_v31 = vld [vmem:[%s1715_s1 + $0x8] sm:$0xff] }
  0x1c   : > { %391 = vmatpush.msra.mxu0 %v368_v10  ;;  %504 = vmatpush.msra.mxu1 %v369_v11  ;;  %v316_v32 = vld [vmem:[%s1455_s17] sm:$0xff]  ;;  %v317_v33 = vld [vmem:[%s1455_s17 + $0x8] sm:$0xff]  ;;  %v318_v34 = vld [vmem:[%s1455_s17 + $0x10] sm:$0xff] }
  0x1d   : > { %v319_v35 = vld [vmem:[%s1455_s17 + $0x18] sm:$0xff]  ;;  %v320_v36 = vld [vmem:[%s1455_s17 + $0x20] sm:$0xff]  ;;  %v321_v37 = vld [vmem:[%s1455_s17 + $0x28] sm:$0xff] }
  0x1e   : > { %392 = vmatpush.msra.mxu0 %v366_v12  ;;  %505 = vmatpush.msra.mxu1 %v367_v13  ;;  %v322_v38 = vld [vmem:[%s1455_s17 + $0x30] sm:$0xff]  ;;  %v323_v39 = vld [vmem:[%s1455_s17 + $0x38] sm:$0xff]  ;;  %v324_v40 = vld [vmem:[%s1455_s17 + $0x40] sm:$0xff] }
  0x1f   : > { %v691_v41 = vld [vmem:[#allocation2 + $0x78] sm:$0xff]  ;;  %v690_v43 = vld [vmem:[#allocation2 + $0x70] sm:$0xff]  ;;  %v689_v45 = vld [vmem:[#allocation2 + $0x68] sm:$0xff] }
  0x20   : > { %393 = vmatpush.msra.mxu0 %v364_v14  ;;  %506 = vmatpush.msra.mxu1 %v365_v15  ;;  %v824_v42 = vld [vmem:[#allocation4 + $0x78] sm:$0xff]  ;;  %v823_v44 = vld [vmem:[#allocation4 + $0x70] sm:$0xff]  ;;  %v822_v46 = vld [vmem:[#allocation4 + $0x68] sm:$0xff] }
  0x21   : > { %696 = vmatpush.msra.mxu2 %v691_v41  ;;  %829 = vmatpush.msra.mxu3 %v824_v42  ;;  %v325_v47 = vld [vmem:[%s1455_s17 + $0x48] sm:$0xff]  ;;  %v688_v48 = vld [vmem:[#allocation2 + $0x60] sm:$0xff]  ;;  %v687_v50 = vld [vmem:[#allocation2 + $0x58] sm:$0xff] }
  0x22   : > { %394 = vmatpush.msra.mxu0 %v362_v16  ;;  %507 = vmatpush.msra.mxu1 %v363_v17  ;;  %v821_v49 = vld [vmem:[#allocation4 + $0x60] sm:$0xff]  ;;  %v820_v51 = vld [vmem:[#allocation4 + $0x58] sm:$0xff]  ;;  %v686_v52 = vld [vmem:[#allocation2 + $0x50] sm:$0xff] }
  0x23   : > { %697 = vmatpush.msra.mxu2 %v690_v43  ;;  %830 = vmatpush.msra.mxu3 %v823_v44  ;;  %v819_v53 = vld [vmem:[#allocation4 + $0x50] sm:$0xff]  ;;  %v685_v54 = vld [vmem:[#allocation2 + $0x48] sm:$0xff]  ;;  %v684_v57 = vld [vmem:[#allocation2 + $0x40] sm:$0xff] }
  0x24   : > { %395 = vmatpush.msra.mxu0 %v360_v18  ;;  %508 = vmatpush.msra.mxu1 %v361_v19  ;;  %v818_v55 = vld [vmem:[#allocation4 + $0x48] sm:$0xff]  ;;  %v326_v56 = vld [vmem:[%s1455_s17 + $0x50] sm:$0xff]  ;;  %v817_v58 = vld [vmem:[#allocation4 + $0x40] sm:$0xff] }
  0x25   : > { %698 = vmatpush.msra.mxu2 %v689_v45  ;;  %831 = vmatpush.msra.mxu3 %v822_v46  ;;  %v683_v59 = vld [vmem:[#allocation2 + $0x38] sm:$0xff]  ;;  %v682_v61 = vld [vmem:[#allocation2 + $0x30] sm:$0xff]  ;;  %v681_v63 = vld [vmem:[#allocation2 + $0x28] sm:$0xff] }
  0x26   : > { %396 = vmatpush.msra.mxu0 %v358_v20  ;;  %509 = vmatpush.msra.mxu1 %v359_v21  ;;  %v816_v60 = vld [vmem:[#allocation4 + $0x38] sm:$0xff]  ;;  %v815_v62 = vld [vmem:[#allocation4 + $0x30] sm:$0xff]  ;;  %v814_v0 = vld [vmem:[#allocation4 + $0x28] sm:$0xff] }
  0x27   : > { %699 = vmatpush.msra.mxu2 %v688_v48  ;;  %832 = vmatpush.msra.mxu3 %v821_v49  ;;  %v327_v1 = vld [vmem:[%s1455_s17 + $0x58] sm:$0xff]  ;;  %v680_v2 = vld [vmem:[#allocation2 + $0x20] sm:$0xff]  ;;  %v678_v6 = vld [vmem:[#allocation2 + $0x10] sm:$0xff] }
  0x28   : > { %397 = vmatpush.msra.mxu0 %v356_v22  ;;  %510 = vmatpush.msra.mxu1 %v357_v23  ;;  %v813_v3 = vld [vmem:[#allocation4 + $0x20] sm:$0xff]  ;;  %v679_v4 = vld [vmem:[#allocation2 + $0x18] sm:$0xff]  ;;  %v811_v7 = vld [vmem:[#allocation4 + $0x10] sm:$0xff] }
  0x29   : > { %700 = vmatpush.msra.mxu2 %v687_v50  ;;  %833 = vmatpush.msra.mxu3 %v820_v51  ;;  %v812_v5 = vld [vmem:[#allocation4 + $0x18] sm:$0xff]  ;;  %v328_v8 = vld [vmem:[%s1455_s17 + $0x60] sm:$0xff]  ;;  %v677_v9 = vld [vmem:[#allocation2 + $0x8] sm:$0xff] }
  0x2a   : > { %398 = vmatpush.msra.mxu0 %v354_v24  ;;  %511 = vmatpush.msra.mxu1 %v355_v25  ;;  %v810_v10 = vld [vmem:[#allocation4 + $0x8] sm:$0xff]  ;;  %v676_v11 = vld [vmem:[#allocation2] sm:$0xff]  ;;  %v330_v14 = vld [vmem:[%s1455_s17 + $0x70] sm:$0xff] }
  0x2b   : > { %701 = vmatpush.msra.mxu2 %v686_v52  ;;  %834 = vmatpush.msra.mxu3 %v819_v53  ;;  %v809_v12 = vld [vmem:[#allocation4] sm:$0xff]  ;;  %v329_v13 = vld [vmem:[%s1455_s17 + $0x68] sm:$0xff]  ;;  %v331_v15 = vld [vmem:[%s1455_s17 + $0x78] sm:$0xff] }
  0x2c   : > { %399 = vmatpush.msra.mxu0 %v352_v26  ;;  %512 = vmatpush.msra.mxu1 %v353_v27  ;;  %v380_v16 = vld [vmem:[%s1716_s2] sm:$0x3]  ;;  %v335_v42 = vld [vmem:[%s1455_s17 + $0x98] sm:$0xff] }
  0x2d   : > { %702 = vmatpush.msra.mxu2 %v685_v54  ;;  %835 = vmatpush.msra.mxu3 %v818_v55  ;;  %v1482_v17 = vperm.slane %v380_v16, 0  ;;  %v1484_v18 = vperm.slane %v380_v16, 1  ;;  %v332_v21 = vld [vmem:[%s1455_s17 + $0x80] sm:$0xff] }
  0x2e   : > { %400 = vmatpush.msra.mxu0 %v350_v28  ;;  %513 = vmatpush.msra.mxu1 %v351_v29  ;;  %v333_v28 = vld [vmem:[%s1455_s17 + $0x88] sm:$0xff]  ;;  %v336_v49 = vld [vmem:[%s1455_s17 + $0xa0] sm:$0xff] }
  0x2f   : > { %703 = vmatpush.msra.mxu2 %v684_v57  ;;  %836 = vmatpush.msra.mxu3 %v817_v58 }
  0x30   : > { %401 = vmatpush.msra.mxu0 %v348_v30  ;;  %514 = vmatpush.msra.mxu1 %v349_v31 }
  0x31   : > { %402 = vmatmul.f32.vlgmr.msra.gmra.mxu0 %v316_v32  ;;  %515 = vmatmul.f32.vlgmr.msra.gmra.mxu1 %v316_v32 }
  0x32   : > { %704 = vmatpush.msra.mxu2 %v683_v59  ;;  %837 = vmatpush.msra.mxu3 %v816_v60 }
  0x34   : > { %705 = vmatpush.msra.mxu2 %v682_v61  ;;  %838 = vmatpush.msra.mxu3 %v815_v62 }
  0x36   : > { %706 = vmatpush.msra.mxu2 %v681_v63  ;;  %839 = vmatpush.msra.mxu3 %v814_v0  ;;  %v338_v63 = vld [vmem:[%s1455_s17 + $0xb0] sm:$0xff] }
  0x38   : > { %707 = vmatpush.msra.mxu2 %v680_v2  ;;  %840 = vmatpush.msra.mxu3 %v813_v3 }
  0x39   : > { %405 = vmatmul.f32.gmra.mxu0 %v317_v33  ;;  %518 = vmatmul.f32.gmra.mxu1 %v317_v33 }
  0x3a   : > { %708 = vmatpush.msra.mxu2 %v679_v4  ;;  %841 = vmatpush.msra.mxu3 %v812_v5 }
  0x3c   : > { %709 = vmatpush.msra.mxu2 %v678_v6  ;;  %842 = vmatpush.msra.mxu3 %v811_v7  ;;  %v339_v6 = vld [vmem:[%s1455_s17 + $0xb8] sm:$0xff] }
  0x3e   : > { %710 = vmatpush.msra.mxu2 %v677_v9  ;;  %843 = vmatpush.msra.mxu3 %v810_v10 }
  0x40   : > { %711 = vmatpush.msra.mxu2 %v676_v11  ;;  %844 = vmatpush.msra.mxu3 %v809_v12 }
  0x41   : > { %408 = vmatmul.f32.gmra.mxu0 %v318_v34  ;;  %521 = vmatmul.f32.gmra.mxu1 %v318_v34 }
  0x49   : > { %411 = vmatmul.f32.gmra.mxu0 %v319_v35  ;;  %524 = vmatmul.f32.gmra.mxu1 %v319_v35  ;;  %v334_v35 = vld [vmem:[%s1455_s17 + $0x90] sm:$0xff] }
  0x51   : > { %414 = vmatmul.f32.gmra.mxu0 %v320_v36  ;;  %527 = vmatmul.f32.gmra.mxu1 %v320_v36 }
  0x59   : > { %417 = vmatmul.f32.gmra.mxu0 %v321_v37  ;;  %530 = vmatmul.f32.gmra.mxu1 %v321_v37 }
  0x61   : > { %420 = vmatmul.f32.gmra.mxu0 %v322_v38  ;;  %533 = vmatmul.f32.gmra.mxu1 %v322_v38 }
  0x69   : > { %423 = vmatmul.f32.gmra.mxu0 %v323_v39  ;;  %536 = vmatmul.f32.gmra.mxu1 %v323_v39 }
  0x71   : > { %426 = vmatmul.f32.gmra.mxu0 %v324_v40  ;;  %539 = vmatmul.f32.gmra.mxu1 %v324_v40 }
  0x79   : > { %429 = vmatmul.f32.gmra.mxu0 %v325_v47  ;;  %542 = vmatmul.f32.gmra.mxu1 %v325_v47 }
  0x81   : > { %432 = vmatmul.f32.gmra.mxu0 %v326_v56  ;;  %545 = vmatmul.f32.gmra.mxu1 %v326_v56  ;;  %v337_v56 = vld [vmem:[%s1455_s17 + $0xa8] sm:$0xff] }
  0x89   : > { %435 = vmatmul.f32.gmra.mxu0 %v327_v1  ;;  %548 = vmatmul.f32.gmra.mxu1 %v327_v1 }
  0x91   : > { %438 = vmatmul.f32.gmra.mxu0 %v328_v8  ;;  %551 = vmatmul.f32.gmra.mxu1 %v328_v8 }
  0x99   : > { %441 = vmatmul.f32.gmra.mxu0 %v329_v13  ;;  %554 = vmatmul.f32.gmra.mxu1 %v329_v13  ;;  %v340_v13 = vld [vmem:[%s1455_s17 + $0xc0] sm:$0xff] }
  0xa1   : > { %444 = vmatmul.f32.gmra.mxu0 %v330_v14  ;;  %557 = vmatmul.f32.gmra.mxu1 %v330_v14 }
  0xa9   : > { %447 = vmatmul.f32.gmra.mxu0 %v331_v15  ;;  %560 = vmatmul.f32.gmra.mxu1 %v331_v15 }
  0xae   : > { %v403_v19 = vpop.f32.mrf.mxu0  ;;  %v516_v20 = vpop.f32.mrf.mxu1 }
  0xaf   : > { %v404_v22 = vadd.f32 %v403_v19, %v1482_v17  ;;  %v517_v23 = vadd.f32 %v516_v20, %v1484_v18 }
  0xb1   : > { %450 = vmatmul.f32.gmra.mxu0 %v332_v21  ;;  %563 = vmatmul.f32.gmra.mxu1 %v332_v21  ;;  %v612_v24 = vmax.f32 %v404_v22, 0.0  ;;  %v613_v25 = vmax.f32 %v517_v23, 0.0  ;;  %v341_v22 = vld [vmem:[%s1455_s17 + $0xc8] sm:$0xff] }
  0xb3   : > { %712 = vmatmul.f32.vlgmr.msra.gmra.mxu2 %v612_v24  ;;  %845 = vmatmul.f32.vlgmr.msra.gmra.mxu3 %v613_v25 }
  0xb6   : > { %v406_v26 = vpop.f32.mrf.mxu0  ;;  %v519_v27 = vpop.f32.mrf.mxu1 }
  0xb7   : > { %v407_v29 = vadd.f32 %v406_v26, %v1482_v17  ;;  %v520_v30 = vadd.f32 %v519_v27, %v1484_v18 }
  0xb9   : > { %453 = vmatmul.f32.gmra.mxu0 %v333_v28  ;;  %566 = vmatmul.f32.gmra.mxu1 %v333_v28  ;;  %v614_v31 = vmax.f32 %v407_v29, 0.0  ;;  %v615_v32 = vmax.f32 %v520_v30, 0.0  ;;  %v342_v29 = vld [vmem:[%s1455_s17 + $0xd0] sm:$0xff] }
  0xbb   : > { %715 = vmatmul.f32.gmra.mxu2 %v614_v31  ;;  %848 = vmatmul.f32.gmra.mxu3 %v615_v32 }
  0xbe   : > { %v409_v33 = vpop.f32.mrf.mxu0  ;;  %v522_v34 = vpop.f32.mrf.mxu1 }
  0xbf   : > { %v410_v36 = vadd.f32 %v409_v33, %v1482_v17  ;;  %v523_v37 = vadd.f32 %v522_v34, %v1484_v18 }
  0xc1   : > { %456 = vmatmul.f32.gmra.mxu0 %v334_v35  ;;  %569 = vmatmul.f32.gmra.mxu1 %v334_v35  ;;  %v616_v38 = vmax.f32 %v410_v36, 0.0  ;;  %v617_v39 = vmax.f32 %v523_v37, 0.0  ;;  %v343_v36 = vld [vmem:[%s1455_s17 + $0xd8] sm:$0xff] }
  0xc3   : > { %718 = vmatmul.f32.gmra.mxu2 %v616_v38  ;;  %851 = vmatmul.f32.gmra.mxu3 %v617_v39 }
  0xc6   : > { %v412_v40 = vpop.f32.mrf.mxu0  ;;  %v525_v41 = vpop.f32.mrf.mxu1 }
  0xc7   : > { %v413_v43 = vadd.f32 %v412_v40, %v1482_v17  ;;  %v526_v44 = vadd.f32 %v525_v41, %v1484_v18 }
  0xc9   : > { %459 = vmatmul.f32.gmra.mxu0 %v335_v42  ;;  %572 = vmatmul.f32.gmra.mxu1 %v335_v42  ;;  %v618_v45 = vmax.f32 %v413_v43, 0.0  ;;  %v619_v46 = vmax.f32 %v526_v44, 0.0  ;;  %v344_v43 = vld [vmem:[%s1455_s17 + $0xe0] sm:$0xff] }
  0xcb   : > { %721 = vmatmul.f32.gmra.mxu2 %v618_v45  ;;  %854 = vmatmul.f32.gmra.mxu3 %v619_v46 }
  0xce   : > { %v415_v47 = vpop.f32.mrf.mxu0  ;;  %v528_v48 = vpop.f32.mrf.mxu1 }
  0xcf   : > { %v416_v50 = vadd.f32 %v415_v47, %v1482_v17  ;;  %v529_v51 = vadd.f32 %v528_v48, %v1484_v18 }
  0xd1   : > { %462 = vmatmul.f32.gmra.mxu0 %v336_v49  ;;  %575 = vmatmul.f32.gmra.mxu1 %v336_v49  ;;  %v620_v52 = vmax.f32 %v416_v50, 0.0  ;;  %v621_v53 = vmax.f32 %v529_v51, 0.0  ;;  %v345_v50 = vld [vmem:[%s1455_s17 + $0xe8] sm:$0xff] }
  0xd3   : > { %724 = vmatmul.f32.gmra.mxu2 %v620_v52  ;;  %857 = vmatmul.f32.gmra.mxu3 %v621_v53 }
  0xd6   : > { %v418_v54 = vpop.f32.mrf.mxu0  ;;  %v531_v55 = vpop.f32.mrf.mxu1 }
  0xd7   : > { %v419_v57 = vadd.f32 %v418_v54, %v1482_v17  ;;  %v532_v58 = vadd.f32 %v531_v55, %v1484_v18 }
  0xd9   : > { %465 = vmatmul.f32.gmra.mxu0 %v337_v56  ;;  %578 = vmatmul.f32.gmra.mxu1 %v337_v56  ;;  %v622_v59 = vmax.f32 %v419_v57, 0.0  ;;  %v623_v60 = vmax.f32 %v532_v58, 0.0  ;;  %v346_v57 = vld [vmem:[%s1455_s17 + $0xf0] sm:$0xff] }
  0xdb   : > { %727 = vmatmul.f32.gmra.mxu2 %v622_v59  ;;  %860 = vmatmul.f32.gmra.mxu3 %v623_v60 }
  0xde   : > { %v421_v61 = vpop.f32.mrf.mxu0  ;;  %v534_v62 = vpop.f32.mrf.mxu1 }
  0xdf   : > { %v422_v0 = vadd.f32 %v421_v61, %v1482_v17  ;;  %v535_v1 = vadd.f32 %v534_v62, %v1484_v18 }
  0xe1   : > { %468 = vmatmul.f32.gmra.mxu0 %v338_v63  ;;  %581 = vmatmul.f32.gmra.mxu1 %v338_v63  ;;  %v624_v2 = vmax.f32 %v422_v0, 0.0  ;;  %v625_v3 = vmax.f32 %v535_v1, 0.0  ;;  %v347_v0 = vld [vmem:[%s1455_s17 + $0xf8] sm:$0xff] }
  0xe3   : > { %730 = vmatmul.f32.gmra.mxu2 %v624_v2  ;;  %863 = vmatmul.f32.gmra.mxu3 %v625_v3 }
  0xe6   : > { %v424_v4 = vpop.f32.mrf.mxu0  ;;  %v537_v5 = vpop.f32.mrf.mxu1 }
  0xe7   : > { %v425_v7 = vadd.f32 %v424_v4, %v1482_v17  ;;  %v538_v8 = vadd.f32 %v537_v5, %v1484_v18 }
  0xe9   : > { %471 = vmatmul.f32.gmra.mxu0 %v339_v6  ;;  %584 = vmatmul.f32.gmra.mxu1 %v339_v6  ;;  %v626_v9 = vmax.f32 %v425_v7, 0.0  ;;  %v627_v10 = vmax.f32 %v538_v8, 0.0 }
  0xeb   : > { %733 = vmatmul.f32.gmra.mxu2 %v626_v9  ;;  %866 = vmatmul.f32.gmra.mxu3 %v627_v10 }
  0xee   : > { %v427_v11 = vpop.f32.mrf.mxu0  ;;  %v540_v12 = vpop.f32.mrf.mxu1 }
  0xef   : > { %v428_v14 = vadd.f32 %v427_v11, %v1482_v17  ;;  %v541_v15 = vadd.f32 %v540_v12, %v1484_v18  ;;  %v1539_v11 = vld [vmem:[%s1718_s4] ss:$0 sm:$0xff] }
  0xf0   : > { %v1544_v12 = vld [vmem:[%s1720_s6] ss:$0 sm:$0xff] }
  0xf1   : > { %v628_v16 = vmax.f32 %v428_v14, 0.0  ;;  %v629_v19 = vmax.f32 %v541_v15, 0.0  ;;  %474 = vmatmul.f32.gmra.mxu0 %v340_v13  ;;  %587 = vmatmul.f32.gmra.mxu1 %v340_v13 }
  0xf3   : > { %736 = vmatmul.f32.gmra.mxu2 %v628_v16  ;;  %869 = vmatmul.f32.gmra.mxu3 %v629_v19 }
  0xf6   : > { %v430_v20 = vpop.f32.mrf.mxu0  ;;  %v543_v21 = vpop.f32.mrf.mxu1 }
  0xf7   : > { %v431_v23 = vadd.f32 %v430_v20, %v1482_v17  ;;  %v544_v24 = vadd.f32 %v543_v21, %v1484_v18 }
  0xf9   : > { %v630_v25 = vmax.f32 %v431_v23, 0.0  ;;  %v631_v26 = vmax.f32 %v544_v24, 0.0  ;;  %477 = vmatmul.f32.gmra.mxu0 %v341_v22  ;;  %590 = vmatmul.f32.gmra.mxu1 %v341_v22 }
  0xfb   : > { %739 = vmatmul.f32.gmra.mxu2 %v630_v25  ;;  %872 = vmatmul.f32.gmra.mxu3 %v631_v26 }
  0xfe   : > { %v433_v27 = vpop.f32.mrf.mxu0  ;;  %v546_v28 = vpop.f32.mrf.mxu1 }
  0xff   : > { %v434_v30 = vadd.f32 %v433_v27, %v1482_v17  ;;  %v547_v31 = vadd.f32 %v546_v28, %v1484_v18 }
 0x101   : > { %v632_v32 = vmax.f32 %v434_v30, 0.0  ;;  %v633_v33 = vmax.f32 %v547_v31, 0.0  ;;  %480 = vmatmul.f32.gmra.mxu0 %v342_v29  ;;  %593 = vmatmul.f32.gmra.mxu1 %v342_v29 }
 0x103   : > { %742 = vmatmul.f32.gmra.mxu2 %v632_v32  ;;  %875 = vmatmul.f32.gmra.mxu3 %v633_v33 }
 0x106   : > { %v436_v34 = vpop.f32.mrf.mxu0  ;;  %v549_v35 = vpop.f32.mrf.mxu1 }
 0x107   : > { %v437_v37 = vadd.f32 %v436_v34, %v1482_v17  ;;  %v550_v38 = vadd.f32 %v549_v35, %v1484_v18 }
 0x109   : > { %v634_v39 = vmax.f32 %v437_v37, 0.0  ;;  %v635_v40 = vmax.f32 %v550_v38, 0.0  ;;  %483 = vmatmul.f32.gmra.mxu0 %v343_v36  ;;  %596 = vmatmul.f32.gmra.mxu1 %v343_v36 }
 0x10b   : > { %745 = vmatmul.f32.gmra.mxu2 %v634_v39  ;;  %878 = vmatmul.f32.gmra.mxu3 %v635_v40 }
 0x10e   : > { %v439_v41 = vpop.f32.mrf.mxu0  ;;  %v552_v42 = vpop.f32.mrf.mxu1 }
 0x10f   : > { %v440_v44 = vadd.f32 %v439_v41, %v1482_v17  ;;  %v553_v45 = vadd.f32 %v552_v42, %v1484_v18 }
 0x111   : > { %v636_v46 = vmax.f32 %v440_v44, 0.0  ;;  %v637_v47 = vmax.f32 %v553_v45, 0.0  ;;  %486 = vmatmul.f32.gmra.mxu0 %v344_v43  ;;  %599 = vmatmul.f32.gmra.mxu1 %v344_v43 }
 0x113   : > { %748 = vmatmul.f32.gmra.mxu2 %v636_v46  ;;  %881 = vmatmul.f32.gmra.mxu3 %v637_v47 }
 0x116   : > { %v442_v48 = vpop.f32.mrf.mxu0  ;;  %v555_v49 = vpop.f32.mrf.mxu1 }
 0x117   : > { %v443_v51 = vadd.f32 %v442_v48, %v1482_v17  ;;  %v556_v52 = vadd.f32 %v555_v49, %v1484_v18 }
 0x119   : > { %v638_v53 = vmax.f32 %v443_v51, 0.0  ;;  %v639_v54 = vmax.f32 %v556_v52, 0.0  ;;  %489 = vmatmul.f32.gmra.mxu0 %v345_v50  ;;  %602 = vmatmul.f32.gmra.mxu1 %v345_v50 }
 0x11b   : > { %751 = vmatmul.f32.gmra.mxu2 %v638_v53  ;;  %884 = vmatmul.f32.gmra.mxu3 %v639_v54 }
 0x11e   : > { %v445_v55 = vpop.f32.mrf.mxu0  ;;  %v558_v56 = vpop.f32.mrf.mxu1 }
 0x11f   : > { %v446_v58 = vadd.f32 %v445_v55, %v1482_v17  ;;  %v559_v59 = vadd.f32 %v558_v56, %v1484_v18 }
 0x121   : > { %v640_v60 = vmax.f32 %v446_v58, 0.0  ;;  %v641_v61 = vmax.f32 %v559_v59, 0.0  ;;  %492 = vmatmul.f32.gmra.mxu0 %v346_v57  ;;  %605 = vmatmul.f32.gmra.mxu1 %v346_v57 }
 0x123   : > { %754 = vmatmul.f32.gmra.mxu2 %v640_v60  ;;  %887 = vmatmul.f32.gmra.mxu3 %v641_v61 }
 0x126   : > { %v448_v62 = vpop.f32.mrf.mxu0  ;;  %v561_v63 = vpop.f32.mrf.mxu1 }
 0x127   : > { %v449_v1 = vadd.f32 %v448_v62, %v1482_v17  ;;  %v562_v2 = vadd.f32 %v561_v63, %v1484_v18 }
 0x129   : > { %v642_v3 = vmax.f32 %v449_v1, 0.0  ;;  %v643_v4 = vmax.f32 %v562_v2, 0.0  ;;  %495 = vmatmul.f32.gmra.mxu0 %v347_v0  ;;  %608 = vmatmul.f32.gmra.mxu1 %v347_v0 }
 0x12b   : > { %757 = vmatmul.f32.gmra.mxu2 %v642_v3  ;;  %890 = vmatmul.f32.gmra.mxu3 %v643_v4 }
 0x12e   : > { %v451_v5 = vpop.f32.mrf.mxu0  ;;  %v564_v6 = vpop.f32.mrf.mxu1 }
 0x12f   : > { %v452_v7 = vadd.f32 %v451_v5, %v1482_v17  ;;  %v565_v8 = vadd.f32 %v564_v6, %v1484_v18 }
 0x131   : > { %v644_v9 = vmax.f32 %v452_v7, 0.0  ;;  %v645_v10 = vmax.f32 %v565_v8, 0.0 }
 0x133   : > { %760 = vmatmul.f32.gmra.mxu2 %v644_v9  ;;  %893 = vmatmul.f32.gmra.mxu3 %v645_v10 }
 0x136   : > { %v454_v13 = vpop.f32.mrf.mxu0  ;;  %v567_v14 = vpop.f32.mrf.mxu1 }
 0x137   : > { %v455_v15 = vadd.f32 %v454_v13, %v1482_v17  ;;  %v568_v16 = vadd.f32 %v567_v14, %v1484_v18  ;;  %v713_v19 = vpop.f32.mrf.mxu2  ;;  %v846_v20 = vpop.f32.mrf.mxu3 }
 0x138   : > { %v714_v21 = vadd.f32 %v1539_v11, %v713_v19  ;;  %v847_v22 = vadd.f32 %v1544_v12, %v846_v20 }
 0x139   : > { %v646_v23 = vmax.f32 %v455_v15, 0.0  ;;  %v647_v24 = vmax.f32 %v568_v16, 0.0 }
 0x13a   : > { %v942_v25 = vmul.f32 %v847_v22, %v714_v21 }
 0x13b   : > { %763 = vmatmul.f32.gmra.mxu2 %v646_v23  ;;  %896 = vmatmul.f32.gmra.mxu3 %v647_v24 }
 0x13c   : > { %974 = vadd.xlane.f32.xlu0 %v942_v25 }
 0x13e   : > { %v457_v26 = vpop.f32.mrf.mxu0  ;;  %v570_v27 = vpop.f32.mrf.mxu1 }
 0x13f   : > { %v458_v28 = vadd.f32 %v457_v26, %v1482_v17  ;;  %v571_v29 = vadd.f32 %v570_v27, %v1484_v18  ;;  %v716_v30 = vpop.f32.mrf.mxu2  ;;  %v849_v31 = vpop.f32.mrf.mxu3 }
 0x140   : > { %v717_v32 = vadd.f32 %v1539_v11, %v716_v30  ;;  %v850_v33 = vadd.f32 %v1544_v12, %v849_v31 }
 0x141   : > { %v648_v34 = vmax.f32 %v458_v28, 0.0  ;;  %v649_v35 = vmax.f32 %v571_v29, 0.0 }
 0x142   : > { %v943_v36 = vmul.f32 %v850_v33, %v717_v32 }
 0x143   : > { %766 = vmatmul.f32.gmra.mxu2 %v648_v34  ;;  %899 = vmatmul.f32.gmra.mxu3 %v649_v35 }
 0x144   : > { %976 = vadd.xlane.f32.xlu0 %v943_v36 }
 0x146   : > { %v460_v37 = vpop.f32.mrf.mxu0  ;;  %v573_v38 = vpop.f32.mrf.mxu1 }
 0x147   : > { %v461_v39 = vadd.f32 %v460_v37, %v1482_v17  ;;  %v574_v40 = vadd.f32 %v573_v38, %v1484_v18  ;;  %v719_v41 = vpop.f32.mrf.mxu2  ;;  %v852_v42 = vpop.f32.mrf.mxu3 }
 0x148   : > { %v720_v43 = vadd.f32 %v1539_v11, %v719_v41  ;;  %v853_v44 = vadd.f32 %v1544_v12, %v852_v42 }
 0x149   : > { %v650_v45 = vmax.f32 %v461_v39, 0.0  ;;  %v651_v46 = vmax.f32 %v574_v40, 0.0 }
 0x14a   : > { %v944_v47 = vmul.f32 %v853_v44, %v720_v43 }
 0x14b   : > { %769 = vmatmul.f32.gmra.mxu2 %v650_v45  ;;  %902 = vmatmul.f32.gmra.mxu3 %v651_v46 }
 0x14c   : > { %978 = vadd.xlane.f32.xlu1 %v944_v47 }
 0x14e   : > { %v463_v48 = vpop.f32.mrf.mxu0  ;;  %v576_v49 = vpop.f32.mrf.mxu1 }
 0x14f   : > { %v464_v50 = vadd.f32 %v463_v48, %v1482_v17  ;;  %v577_v51 = vadd.f32 %v576_v49, %v1484_v18  ;;  %v722_v52 = vpop.f32.mrf.mxu2  ;;  %v855_v53 = vpop.f32.mrf.mxu3 }
 0x150   : > { %v723_v54 = vadd.f32 %v1539_v11, %v722_v52  ;;  %v856_v55 = vadd.f32 %v1544_v12, %v855_v53 }
 0x151   : > { %v652_v56 = vmax.f32 %v464_v50, 0.0  ;;  %v653_v57 = vmax.f32 %v577_v51, 0.0 }
 0x152   : > { %v945_v58 = vmul.f32 %v856_v55, %v723_v54 }
 0x153   : > { %772 = vmatmul.f32.gmra.mxu2 %v652_v56  ;;  %905 = vmatmul.f32.gmra.mxu3 %v653_v57 }
 0x154   : > { %980 = vadd.xlane.f32.xlu1 %v945_v58 }
 0x156   : > { %v466_v59 = vpop.f32.mrf.mxu0  ;;  %v579_v60 = vpop.f32.mrf.mxu1 }
 0x157   : > { %v467_v61 = vadd.f32 %v466_v59, %v1482_v17  ;;  %v580_v62 = vadd.f32 %v579_v60, %v1484_v18  ;;  %v725_v63 = vpop.f32.mrf.mxu2  ;;  %v858_v0 = vpop.f32.mrf.mxu3 }
 0x158   : > { %v726_v1 = vadd.f32 %v1539_v11, %v725_v63  ;;  %v859_v2 = vadd.f32 %v1544_v12, %v858_v0 }
 0x159   : > { %v654_v3 = vmax.f32 %v467_v61, 0.0  ;;  %v655_v4 = vmax.f32 %v580_v62, 0.0 }
 0x15a   : > { %v946_v5 = vmul.f32 %v859_v2, %v726_v1 }
 0x15b   : > { %775 = vmatmul.f32.gmra.mxu2 %v654_v3  ;;  %908 = vmatmul.f32.gmra.mxu3 %v655_v4 }
 0x15c   : > { %982 = vadd.xlane.f32.xlu2 %v946_v5 }
 0x15e   : > { %v469_v6 = vpop.f32.mrf.mxu0  ;;  %v582_v7 = vpop.f32.mrf.mxu1 }
 0x15f   : > { %v470_v8 = vadd.f32 %v469_v6, %v1482_v17  ;;  %v583_v9 = vadd.f32 %v582_v7, %v1484_v18  ;;  %v728_v10 = vpop.f32.mrf.mxu2  ;;  %v861_v13 = vpop.f32.mrf.mxu3 }
 0x160   : > { %v729_v14 = vadd.f32 %v1539_v11, %v728_v10  ;;  %v862_v15 = vadd.f32 %v1544_v12, %v861_v13 }
 0x161   : > { %v656_v16 = vmax.f32 %v470_v8, 0.0  ;;  %v657_v19 = vmax.f32 %v583_v9, 0.0 }
 0x162   : > { %v947_v20 = vmul.f32 %v862_v15, %v729_v14 }
 0x163   : > { %778 = vmatmul.f32.gmra.mxu2 %v656_v16  ;;  %911 = vmatmul.f32.gmra.mxu3 %v657_v19 }
 0x164   : > { %984 = vadd.xlane.f32.xlu2 %v947_v20 }
 0x166   : > { %v472_v21 = vpop.f32.mrf.mxu0  ;;  %v585_v22 = vpop.f32.mrf.mxu1 }
 0x167   : > { %v473_v23 = vadd.f32 %v472_v21, %v1482_v17  ;;  %v586_v24 = vadd.f32 %v585_v22, %v1484_v18  ;;  %v731_v25 = vpop.f32.mrf.mxu2  ;;  %v864_v26 = vpop.f32.mrf.mxu3 }
 0x168   : > { %v732_v27 = vadd.f32 %v1539_v11, %v731_v25  ;;  %v865_v28 = vadd.f32 %v1544_v12, %v864_v26 }
 0x169   : > { %v658_v29 = vmax.f32 %v473_v23, 0.0  ;;  %v659_v30 = vmax.f32 %v586_v24, 0.0 }
 0x16a   : > { %v948_v31 = vmul.f32 %v865_v28, %v732_v27 }
 0x16b   : > { %781 = vmatmul.f32.gmra.mxu2 %v658_v29  ;;  %914 = vmatmul.f32.gmra.mxu3 %v659_v30 }
 0x16c   : > { %986 = vadd.xlane.f32.xlu0 %v948_v31 }
 0x16e   : > { %v475_v32 = vpop.f32.mrf.mxu0  ;;  %v588_v33 = vpop.f32.mrf.mxu1 }
 0x16f   : > { %v476_v34 = vadd.f32 %v475_v32, %v1482_v17  ;;  %v589_v35 = vadd.f32 %v588_v33, %v1484_v18  ;;  %v734_v36 = vpop.f32.mrf.mxu2  ;;  %v867_v37 = vpop.f32.mrf.mxu3 }
 0x170   : > { %v735_v38 = vadd.f32 %v1539_v11, %v734_v36  ;;  %v868_v39 = vadd.f32 %v1544_v12, %v867_v37 }
 0x171   : > { %v660_v40 = vmax.f32 %v476_v34, 0.0  ;;  %v661_v41 = vmax.f32 %v589_v35, 0.0 }
 0x172   : > { %v949_v42 = vmul.f32 %v868_v39, %v735_v38 }
 0x173   : > { %784 = vmatmul.f32.gmra.mxu2 %v660_v40  ;;  %917 = vmatmul.f32.gmra.mxu3 %v661_v41 }
 0x174   : > { %988 = vadd.xlane.f32.xlu1 %v949_v42 }
 0x176   : > { %v478_v43 = vpop.f32.mrf.mxu0  ;;  %v591_v44 = vpop.f32.mrf.mxu1 }
 0x177   : > { %v479_v45 = vadd.f32 %v478_v43, %v1482_v17  ;;  %v592_v46 = vadd.f32 %v591_v44, %v1484_v18  ;;  %v737_v47 = vpop.f32.mrf.mxu2  ;;  %v870_v48 = vpop.f32.mrf.mxu3 }
 0x178   : > { %v738_v49 = vadd.f32 %v1539_v11, %v737_v47  ;;  %v871_v50 = vadd.f32 %v1544_v12, %v870_v48 }
 0x179   : > { %v662_v51 = vmax.f32 %v479_v45, 0.0  ;;  %v663_v52 = vmax.f32 %v592_v46, 0.0 }
 0x17a   : > { %v950_v53 = vmul.f32 %v871_v50, %v738_v49 }
 0x17b   : > { %787 = vmatmul.f32.gmra.mxu2 %v662_v51  ;;  %920 = vmatmul.f32.gmra.mxu3 %v663_v52 }
 0x17c   : > { %990 = vadd.xlane.f32.xlu2 %v950_v53 }
 0x17e   : > { %v481_v54 = vpop.f32.mrf.mxu0  ;;  %v594_v55 = vpop.f32.mrf.mxu1 }
 0x17f   : > { %v482_v56 = vadd.f32 %v481_v54, %v1482_v17  ;;  %v595_v57 = vadd.f32 %v594_v55, %v1484_v18  ;;  %v740_v58 = vpop.f32.mrf.mxu2  ;;  %v873_v59 = vpop.f32.mrf.mxu3 }
 0x180   : > { %v741_v60 = vadd.f32 %v1539_v11, %v740_v58  ;;  %v874_v61 = vadd.f32 %v1544_v12, %v873_v59 }
 0x181   : > { %v664_v62 = vmax.f32 %v482_v56, 0.0  ;;  %v665_v63 = vmax.f32 %v595_v57, 0.0 }
 0x182   : > { %v951_v0 = vmul.f32 %v874_v61, %v741_v60 }
 0x183   : > { %790 = vmatmul.f32.gmra.mxu2 %v664_v62  ;;  %923 = vmatmul.f32.gmra.mxu3 %v665_v63 }
 0x184   : > { %992 = vadd.xlane.f32.xlu0 %v951_v0 }
 0x186   : > { %v484_v1 = vpop.f32.mrf.mxu0  ;;  %v597_v2 = vpop.f32.mrf.mxu1 }
 0x187   : > { %v485_v3 = vadd.f32 %v484_v1, %v1482_v17  ;;  %v598_v4 = vadd.f32 %v597_v2, %v1484_v18  ;;  %v743_v5 = vpop.f32.mrf.mxu2  ;;  %v876_v6 = vpop.f32.mrf.mxu3 }
 0x188   : > { %v744_v7 = vadd.f32 %v1539_v11, %v743_v5  ;;  %v877_v8 = vadd.f32 %v1544_v12, %v876_v6 }
 0x189   : > { %v666_v9 = vmax.f32 %v485_v3, 0.0  ;;  %v667_v10 = vmax.f32 %v598_v4, 0.0 }
 0x18a   : > { %v952_v13 = vmul.f32 %v877_v8, %v744_v7 }
 0x18b   : > { %793 = vmatmul.f32.gmra.mxu2 %v666_v9  ;;  %926 = vmatmul.f32.gmra.mxu3 %v667_v10 }
 0x18c   : > { %994 = vadd.xlane.f32.xlu1 %v952_v13 }
 0x18e   : > { %v487_v14 = vpop.f32.mrf.mxu0  ;;  %v600_v15 = vpop.f32.mrf.mxu1 }
 0x18f   : > { %v488_v16 = vadd.f32 %v487_v14, %v1482_v17  ;;  %v601_v19 = vadd.f32 %v600_v15, %v1484_v18  ;;  %v746_v20 = vpop.f32.mrf.mxu2  ;;  %v879_v21 = vpop.f32.mrf.mxu3 }
 0x190   : > { %v747_v22 = vadd.f32 %v1539_v11, %v746_v20  ;;  %v880_v23 = vadd.f32 %v1544_v12, %v879_v21 }
 0x191   : > { %v668_v24 = vmax.f32 %v488_v16, 0.0  ;;  %v669_v25 = vmax.f32 %v601_v19, 0.0 }
 0x192   : > { %v953_v26 = vmul.f32 %v880_v23, %v747_v22 }
 0x193   : > { %796 = vmatmul.f32.gmra.mxu2 %v668_v24  ;;  %929 = vmatmul.f32.gmra.mxu3 %v669_v25 }
 0x194   : > { %996 = vadd.xlane.f32.xlu2 %v953_v26 }
 0x196   : > { %v490_v27 = vpop.f32.mrf.mxu0  ;;  %v603_v28 = vpop.f32.mrf.mxu1 }
 0x197   : > { %v491_v29 = vadd.f32 %v490_v27, %v1482_v17  ;;  %v604_v30 = vadd.f32 %v603_v28, %v1484_v18  ;;  %v749_v31 = vpop.f32.mrf.mxu2  ;;  %v882_v32 = vpop.f32.mrf.mxu3 }
 0x198   : > { %v750_v33 = vadd.f32 %v1539_v11, %v749_v31  ;;  %v883_v34 = vadd.f32 %v1544_v12, %v882_v32 }
 0x199   : > { %v670_v35 = vmax.f32 %v491_v29, 0.0  ;;  %v671_v36 = vmax.f32 %v604_v30, 0.0 }
 0x19a   : > { %v954_v37 = vmul.f32 %v883_v34, %v750_v33 }
 0x19b   : > { %799 = vmatmul.f32.gmra.mxu2 %v670_v35  ;;  %932 = vmatmul.f32.gmra.mxu3 %v671_v36 }
 0x19c   : > { %998 = vadd.xlane.f32.xlu0 %v954_v37 }
 0x19e   : > { %v493_v38 = vpop.f32.mrf.mxu0  ;;  %v606_v39 = vpop.f32.mrf.mxu1 }
 0x19f   : > { %v494_v40 = vadd.f32 %v493_v38, %v1482_v17  ;;  %v607_v41 = vadd.f32 %v606_v39, %v1484_v18  ;;  %v752_v42 = vpop.f32.mrf.mxu2  ;;  %v885_v43 = vpop.f32.mrf.mxu3 }
 0x1a0   : > { %v753_v44 = vadd.f32 %v1539_v11, %v752_v42  ;;  %v886_v45 = vadd.f32 %v1544_v12, %v885_v43 }
 0x1a1   : > { %v672_v46 = vmax.f32 %v494_v40, 0.0  ;;  %v673_v47 = vmax.f32 %v607_v41, 0.0 }
 0x1a2   : > { %v955_v48 = vmul.f32 %v886_v45, %v753_v44 }
 0x1a3   : > { %802 = vmatmul.f32.gmra.mxu2 %v672_v46  ;;  %935 = vmatmul.f32.gmra.mxu3 %v673_v47 }
 0x1a4   : > { %1000 = vadd.xlane.f32.xlu1 %v955_v48 }
 0x1a6   : > { %v496_v49 = vpop.f32.mrf.mxu0  ;;  %v609_v50 = vpop.f32.mrf.mxu1 }
 0x1a7   : > { %v497_v51 = vadd.f32 %v496_v49, %v1482_v17  ;;  %v610_v52 = vadd.f32 %v609_v50, %v1484_v18  ;;  %v755_v53 = vpop.f32.mrf.mxu2  ;;  %v888_v54 = vpop.f32.mrf.mxu3 }
 0x1a8   : > { %v756_v55 = vadd.f32 %v1539_v11, %v755_v53  ;;  %v889_v56 = vadd.f32 %v1544_v12, %v888_v54 }
 0x1a9   : > { %v674_v57 = vmax.f32 %v497_v51, 0.0  ;;  %v675_v58 = vmax.f32 %v610_v52, 0.0 }
 0x1aa   : > { %v956_v59 = vmul.f32 %v889_v56, %v756_v55 }
 0x1ab   : > { %805 = vmatmul.f32.gmra.mxu2 %v674_v57  ;;  %938 = vmatmul.f32.gmra.mxu3 %v675_v58 }
 0x1ac   : > { %1002 = vadd.xlane.f32.xlu2 %v956_v59 }
 0x1af   : > { %v758_v17 = vpop.f32.mrf.mxu2  ;;  %v891_v18 = vpop.f32.mrf.mxu3 }
 0x1b0   : > { %v759_v60 = vadd.f32 %v1539_v11, %v758_v17  ;;  %v892_v61 = vadd.f32 %v1544_v12, %v891_v18  ;;  %v975_v62 = vpop.xlane.xlu0 %974 }
 0x1b1   : > { %1039 = vst.msk [vmem:[%s1611_s11] sm:$0xff] %vm1038_vm0, %v975_v62 }
 0x1b2   : > { %v957_v63 = vmul.f32 %v892_v61, %v759_v60 }
 0x1b4   : > { %1004 = vadd.xlane.f32.xlu0 %v957_v63 }
 0x1b7   : > { %v761_v0 = vpop.f32.mrf.mxu2  ;;  %v894_v1 = vpop.f32.mrf.mxu3 }
 0x1b8   : > { %v762_v2 = vadd.f32 %v1539_v11, %v761_v0  ;;  %v895_v3 = vadd.f32 %v1544_v12, %v894_v1  ;;  %v977_v4 = vpop.xlane.xlu0 %976 }
 0x1b9   : > { %1040 = vst.msk [vmem:[%s1611_s11 + $0x8] sm:$0xff] %vm1038_vm0, %v977_v4 }
 0x1ba   : > { %v958_v5 = vmul.f32 %v895_v3, %v762_v2 }
 0x1bc   : > { %1006 = vadd.xlane.f32.xlu1 %v958_v5 }
 0x1bf   : > { %v764_v6 = vpop.f32.mrf.mxu2  ;;  %v897_v7 = vpop.f32.mrf.mxu3 }
 0x1c0   : > { %v765_v8 = vadd.f32 %v1539_v11, %v764_v6  ;;  %v898_v9 = vadd.f32 %v1544_v12, %v897_v7  ;;  %v979_v10 = vpop.xlane.xlu1 %978 }
 0x1c1   : > { %1041 = vst.msk [vmem:[%s1611_s11 + $0x10] sm:$0xff] %vm1038_vm0, %v979_v10 }
 0x1c2   : > { %v959_v13 = vmul.f32 %v898_v9, %v765_v8 }
 0x1c4   : > { %1008 = vadd.xlane.f32.xlu2 %v959_v13 }
 0x1c7   : > { %v767_v14 = vpop.f32.mrf.mxu2  ;;  %v900_v15 = vpop.f32.mrf.mxu3 }
 0x1c8   : > { %v768_v16 = vadd.f32 %v1539_v11, %v767_v14  ;;  %v901_v19 = vadd.f32 %v1544_v12, %v900_v15  ;;  %v981_v20 = vpop.xlane.xlu1 %980 }
 0x1c9   : > { %1042 = vst.msk [vmem:[%s1611_s11 + $0x18] sm:$0xff] %vm1038_vm0, %v981_v20 }
 0x1ca   : > { %v960_v21 = vmul.f32 %v901_v19, %v768_v16 }
 0x1cc   : > { %1010 = vadd.xlane.f32.xlu0 %v960_v21 }
 0x1cf   : > { %v770_v22 = vpop.f32.mrf.mxu2  ;;  %v903_v23 = vpop.f32.mrf.mxu3 }
 0x1d0   : > { %v771_v24 = vadd.f32 %v1539_v11, %v770_v22  ;;  %v904_v25 = vadd.f32 %v1544_v12, %v903_v23  ;;  %v983_v26 = vpop.xlane.xlu2 %982 }
 0x1d1   : > { %1043 = vst.msk [vmem:[%s1611_s11 + $0x20] sm:$0xff] %vm1038_vm0, %v983_v26 }
 0x1d2   : > { %v961_v27 = vmul.f32 %v904_v25, %v771_v24 }
 0x1d4   : > { %1012 = vadd.xlane.f32.xlu1 %v961_v27 }
 0x1d7   : > { %v773_v28 = vpop.f32.mrf.mxu2  ;;  %v906_v29 = vpop.f32.mrf.mxu3 }
 0x1d8   : > { %v774_v30 = vadd.f32 %v1539_v11, %v773_v28  ;;  %v907_v31 = vadd.f32 %v1544_v12, %v906_v29  ;;  %v985_v32 = vpop.xlane.xlu2 %984 }
 0x1d9   : > { %1044 = vst.msk [vmem:[%s1611_s11 + $0x28] sm:$0xff] %vm1038_vm0, %v985_v32 }
 0x1da   : > { %v962_v33 = vmul.f32 %v907_v31, %v774_v30 }
 0x1dc   : > { %1014 = vadd.xlane.f32.xlu2 %v962_v33 }
 0x1df   : > { %v776_v34 = vpop.f32.mrf.mxu2  ;;  %v909_v35 = vpop.f32.mrf.mxu3 }
 0x1e0   : > { %v777_v36 = vadd.f32 %v1539_v11, %v776_v34  ;;  %v910_v37 = vadd.f32 %v1544_v12, %v909_v35  ;;  %v987_v38 = vpop.xlane.xlu0 %986 }
 0x1e1   : > { %1045 = vst.msk [vmem:[%s1611_s11 + $0x30] sm:$0xff] %vm1038_vm0, %v987_v38 }
 0x1e2   : > { %v963_v39 = vmul.f32 %v910_v37, %v777_v36 }
 0x1e4   : > { %1016 = vadd.xlane.f32.xlu0 %v963_v39 }
 0x1e7   : > { %v779_v40 = vpop.f32.mrf.mxu2  ;;  %v912_v41 = vpop.f32.mrf.mxu3 }
 0x1e8   : > { %v780_v42 = vadd.f32 %v1539_v11, %v779_v40  ;;  %v913_v43 = vadd.f32 %v1544_v12, %v912_v41  ;;  %v989_v44 = vpop.xlane.xlu1 %988 }
 0x1e9   : > { %1046 = vst.msk [vmem:[%s1611_s11 + $0x38] sm:$0xff] %vm1038_vm0, %v989_v44 }
 0x1ea   : > { %v964_v45 = vmul.f32 %v913_v43, %v780_v42 }
 0x1ec   : > { %1018 = vadd.xlane.f32.xlu1 %v964_v45 }
 0x1ef   : > { %v782_v46 = vpop.f32.mrf.mxu2  ;;  %v915_v47 = vpop.f32.mrf.mxu3 }
 0x1f0   : > { %v783_v48 = vadd.f32 %v1539_v11, %v782_v46  ;;  %v916_v49 = vadd.f32 %v1544_v12, %v915_v47  ;;  %v991_v50 = vpop.xlane.xlu2 %990 }
 0x1f1   : > { %1047 = vst.msk [vmem:[%s1611_s11 + $0x40] sm:$0xff] %vm1038_vm0, %v991_v50 }
 0x1f2   : > { %v965_v51 = vmul.f32 %v916_v49, %v783_v48 }
 0x1f4   : > { %1020 = vadd.xlane.f32.xlu2 %v965_v51 }
 0x1f7   : > { %v785_v52 = vpop.f32.mrf.mxu2  ;;  %v918_v53 = vpop.f32.mrf.mxu3 }
 0x1f8   : > { %v786_v54 = vadd.f32 %v1539_v11, %v785_v52  ;;  %v919_v55 = vadd.f32 %v1544_v12, %v918_v53  ;;  %v993_v56 = vpop.xlane.xlu0 %992 }
 0x1f9   : > { %1048 = vst.msk [vmem:[%s1611_s11 + $0x48] sm:$0xff] %vm1038_vm0, %v993_v56 }
 0x1fa   : > { %v966_v57 = vmul.f32 %v919_v55, %v786_v54 }
 0x1fc   : > { %1022 = vadd.xlane.f32.xlu0 %v966_v57 }
 0x1ff   : > { %v788_v58 = vpop.f32.mrf.mxu2  ;;  %v921_v59 = vpop.f32.mrf.mxu3 }
 0x200   : > { %v789_v17 = vadd.f32 %v1539_v11, %v788_v58  ;;  %v922_v18 = vadd.f32 %v1544_v12, %v921_v59  ;;  %v995_v60 = vpop.xlane.xlu1 %994 }
 0x201   : > { %1049 = vst.msk [vmem:[%s1611_s11 + $0x50] sm:$0xff] %vm1038_vm0, %v995_v60 }
 0x202   : > { %v967_v61 = vmul.f32 %v922_v18, %v789_v17 }
 0x204   : > { %1024 = vadd.xlane.f32.xlu1 %v967_v61 }
 0x207   : > { %v791_v62 = vpop.f32.mrf.mxu2  ;;  %v924_v63 = vpop.f32.mrf.mxu3 }
 0x208   : > { %v792_v0 = vadd.f32 %v1539_v11, %v791_v62  ;;  %v925_v1 = vadd.f32 %v1544_v12, %v924_v63  ;;  %v997_v2 = vpop.xlane.xlu2 %996 }
 0x209   : > { %1050 = vst.msk [vmem:[%s1611_s11 + $0x58] sm:$0xff] %vm1038_vm0, %v997_v2 }
 0x20a   : > { %v968_v3 = vmul.f32 %v925_v1, %v792_v0 }
 0x20c   : > { %1026 = vadd.xlane.f32.xlu2 %v968_v3 }
 0x20f   : > { %v794_v4 = vpop.f32.mrf.mxu2  ;;  %v927_v5 = vpop.f32.mrf.mxu3 }
 0x210   : > { %v795_v6 = vadd.f32 %v1539_v11, %v794_v4  ;;  %v928_v7 = vadd.f32 %v1544_v12, %v927_v5  ;;  %v999_v8 = vpop.xlane.xlu0 %998 }
 0x211   : > { %1051 = vst.msk [vmem:[%s1611_s11 + $0x60] sm:$0xff] %vm1038_vm0, %v999_v8 }
 0x212   : > { %v969_v9 = vmul.f32 %v928_v7, %v795_v6 }
 0x214   : > { %1028 = vadd.xlane.f32.xlu0 %v969_v9 }
 0x217   : > { %v797_v10 = vpop.f32.mrf.mxu2  ;;  %v930_v13 = vpop.f32.mrf.mxu3 }
 0x218   : > { %v798_v14 = vadd.f32 %v1539_v11, %v797_v10  ;;  %v931_v15 = vadd.f32 %v1544_v12, %v930_v13  ;;  %v1001_v16 = vpop.xlane.xlu1 %1000 }
 0x219   : > { %1052 = vst.msk [vmem:[%s1611_s11 + $0x68] sm:$0xff] %vm1038_vm0, %v1001_v16 }
 0x21a   : > { %v970_v19 = vmul.f32 %v931_v15, %v798_v14 }
 0x21c   : > { %1030 = vadd.xlane.f32.xlu1 %v970_v19 }
 0x21f   : > { %v800_v20 = vpop.f32.mrf.mxu2  ;;  %v933_v21 = vpop.f32.mrf.mxu3 }
 0x220   : > { %v801_v22 = vadd.f32 %v1539_v11, %v800_v20  ;;  %v934_v23 = vadd.f32 %v1544_v12, %v933_v21  ;;  %v1003_v24 = vpop.xlane.xlu2 %1002 }
 0x221   : > { %1053 = vst.msk [vmem:[%s1611_s11 + $0x70] sm:$0xff] %vm1038_vm0, %v1003_v24 }
 0x222   : > { %v971_v25 = vmul.f32 %v934_v23, %v801_v22 }
 0x224   : > { %1032 = vadd.xlane.f32.xlu2 %v971_v25 }
 0x227   : > { %v803_v26 = vpop.f32.mrf.mxu2  ;;  %v936_v27 = vpop.f32.mrf.mxu3 }
 0x228   : > { %v804_v28 = vadd.f32 %v1539_v11, %v803_v26  ;;  %v937_v29 = vadd.f32 %v1544_v12, %v936_v27  ;;  %v1005_v30 = vpop.xlane.xlu0 %1004 }
 0x229   : > { %1054 = vst.msk [vmem:[%s1611_s11 + $0x78] sm:$0xff] %vm1038_vm0, %v1005_v30 }
 0x22a   : > { %v972_v31 = vmul.f32 %v937_v29, %v804_v28 }
 0x22c   : > { %1034 = vadd.xlane.f32.xlu0 %v972_v31 }
 0x22f   : > { %v806_v32 = vpop.f32.mrf.mxu2  ;;  %v939_v33 = vpop.f32.mrf.mxu3 }
 0x230   : > { %v807_v34 = vadd.f32 %v1539_v11, %v806_v32  ;;  %v940_v35 = vadd.f32 %v1544_v12, %v939_v33  ;;  %v1007_v36 = vpop.xlane.xlu1 %1006 }
 0x231   : > { %1055 = vst.msk [vmem:[%s1611_s11 + $0x80] sm:$0xff] %vm1038_vm0, %v1007_v36 }
 0x232   : > { %v973_v37 = vmul.f32 %v940_v35, %v807_v34 }
 0x234   : > { %1036 = vadd.xlane.f32.xlu1 %v973_v37 }
 0x237   : > { %v1009_v38 = vpop.xlane.xlu2 %1008 }
 0x238   : > { %1056 = vst.msk [vmem:[%s1611_s11 + $0x88] sm:$0xff] %vm1038_vm0, %v1009_v38 }
 0x23f   : > { %v1011_v39 = vpop.xlane.xlu0 %1010 }
 0x240   : > { %1057 = vst.msk [vmem:[%s1611_s11 + $0x90] sm:$0xff] %vm1038_vm0, %v1011_v39 }
 0x247   : > { %v1013_v40 = vpop.xlane.xlu1 %1012 }
 0x248   : > { %1058 = vst.msk [vmem:[%s1611_s11 + $0x98] sm:$0xff] %vm1038_vm0, %v1013_v40 }
 0x24f   : > { %v1015_v11 = vpop.xlane.xlu2 %1014 }
 0x250   : > { %1059 = vst.msk [vmem:[%s1611_s11 + $0xa0] sm:$0xff] %vm1038_vm0, %v1015_v11 }
 0x257   : > { %v1017_v12 = vpop.xlane.xlu0 %1016 }
 0x258   : > { %1060 = vst.msk [vmem:[%s1611_s11 + $0xa8] sm:$0xff] %vm1038_vm0, %v1017_v12 }
 0x25f   : > { %v1019_v41 = vpop.xlane.xlu1 %1018 }
 0x260   : > { %1061 = vst.msk [vmem:[%s1611_s11 + $0xb0] sm:$0xff] %vm1038_vm0, %v1019_v41 }
 0x267   : > { %v1021_v42 = vpop.xlane.xlu2 %1020 }
 0x268   : > { %1062 = vst.msk [vmem:[%s1611_s11 + $0xb8] sm:$0xff] %vm1038_vm0, %v1021_v42 }
 0x26f   : > { %v1023_v43 = vpop.xlane.xlu0 %1022 }
 0x270   : > { %1063 = vst.msk [vmem:[%s1611_s11 + $0xc0] sm:$0xff] %vm1038_vm0, %v1023_v43 }
 0x277   : > { %v1025_v44 = vpop.xlane.xlu1 %1024 }
 0x278   : > { %1064 = vst.msk [vmem:[%s1611_s11 + $0xc8] sm:$0xff] %vm1038_vm0, %v1025_v44 }
 0x27f   : > { %v1027_v45 = vpop.xlane.xlu2 %1026 }
 0x280   : > { %1065 = vst.msk [vmem:[%s1611_s11 + $0xd0] sm:$0xff] %vm1038_vm0, %v1027_v45 }
 0x287   : > { %v1029_v46 = vpop.xlane.xlu0 %1028 }
 0x288   : > { %1066 = vst.msk [vmem:[%s1611_s11 + $0xd8] sm:$0xff] %vm1038_vm0, %v1029_v46 }
 0x28f   : > { %v1031_v47 = vpop.xlane.xlu1 %1030 }
 0x290   : > { %1067 = vst.msk [vmem:[%s1611_s11 + $0xe0] sm:$0xff] %vm1038_vm0, %v1031_v47 }
 0x297   : > { %v1033_v48 = vpop.xlane.xlu2 %1032 }
 0x298   : > { %1068 = vst.msk [vmem:[%s1611_s11 + $0xe8] sm:$0xff] %vm1038_vm0, %v1033_v48 }
 0x29f   : > { %v1035_v49 = vpop.xlane.xlu0 %1034 }
 0x2a0   : > { %1069 = vst.msk [vmem:[%s1611_s11 + $0xf0] sm:$0xff] %vm1038_vm0, %v1035_v49 }
 0x2a7   : > { %v1037_v50 = vpop.xlane.xlu1 %1036 }
 0x2a8   : > { %1070 = vst.msk [vmem:[%s1611_s11 + $0xf8] sm:$0xff] %vm1038_vm0, %v1037_v50 }
 0x2a9 PF: > { %s19_s24 = sadd.s32 1, %s1271_s24  }
 0x2aa   : > { %p16_p7 = scmp.ge.s32.totalorder %s19_s24, 4  }
 0x2ac   :  { %18 = sbr.rel (!%p16_p7) target bundleno = 2 (0x2), region = 87 }
 0x2b1   :  { %1093 = vsyncpa [#allocation3], 1 }
 0x2b2   :  { %1095 = vsyncpa [#allocation3 + $0x1], 1 }
 0x2b3   :  { %1096 = vsyncpa [#allocation5], 1 }

</bundles_post_ra>
